<compile_context>
chip_gen: v6e
topology: v6e:2x2x1
jax: 0.10.0
libtpu: 0.0.40
codegen_flags: <defaults>
</compile_context>

<pallas_src>
import jax
import jax.numpy as jnp
from jax.experimental import pallas as pl
from jax.experimental.pallas import tpu as pltpu


# ----------------------------- kernels ------------------------------------


def _linear_kernel_2d(x_ref, w_ref, b_ref, o_ref):
    # Single K block: one MXU pass per output tile, f32 bias add, single store.
    o_ref[...] = (
        jnp.dot(x_ref[...], w_ref[...], preferred_element_type=jnp.float32)
        + b_ref[...]
    ).astype(o_ref.dtype)


def _linear_kernel_accum_f32(x_ref, w_ref, b_ref, o_ref):
    # Multi-K, f32 output: the output block's index ignores k, so it stays
    # VMEM-resident across the K axis -> accumulate straight into it
    # (no scratch, no finalize VMEM->VMEM copy).
    k = pl.program_id(2)
    part = jnp.dot(x_ref[...], w_ref[...], preferred_element_type=jnp.float32)

    @pl.when(k == 0)
    def _init():
        o_ref[...] = b_ref[...] + part

    @pl.when(k > 0)
    def _accum():
        o_ref[...] += part


def _linear_kernel_accum_cast(x_ref, w_ref, b_ref, o_ref, acc_ref):
    # Multi-K, non-f32 output: f32 VMEM accumulator, cast once at the end.
    k = pl.program_id(2)

    @pl.when(k == 0)
    def _init():
        acc_ref[...] = jnp.broadcast_to(b_ref[...], acc_ref.shape)

    acc_ref[...] += jnp.dot(
        x_ref[...], w_ref[...], preferred_element_type=jnp.float32)

    @pl.when(k == pl.num_programs(2) - 1)
    def _finalize():
        o_ref[...] = acc_ref[...].astype(o_ref.dtype)


# --------------------------- tiling helpers --------------------------------


def _round_up(v, m):
    return (v + m - 1) // m * m


def _choose_lane_tiles(K, N, op_bytes):
    """Lane-dense (multiple-of-128, prefer 256) K / N tiles."""
    def lane_tile(dim, cap):
        t = _round_up(dim, 128)
        if t >= 256:
            t = _round_up(dim, 256)   # full 256-wide MXU passes on v6e/v7x
        return min(t, cap)

    tk_cap = 2048 if op_bytes <= 2 else 1024
    return lane_tile(K, tk_cap), lane_tile(N, 1024)


def _choose_tm(M, grid_n):
    tm = min(_round_up(M, 8), 512)
    # Keep >= 2 parallel output tiles when possible so both v7x TensorCores
    # get work (parallel grid of 1x1 serializes the second core).
    while (tm % 16 == 0
           and pl.cdiv(M, tm) * grid_n < 2
           and pl.cdiv(M, tm // 2) >= 2):
        tm //= 2
    return tm


# ------------------------- init-time param prep -----------------------------


def prepare_linear_params(weight, bias, *, compute_dtype=jnp.float32):
    """One-time (init-time) nn.Linear parameter layout prep.

    * Transposes W to (D_in, D_out) so the kernel runs a plain K-contracting
      MXU dot (no per-tile trans_b layout copy).
    * Zero-pads K/N up to lane tiles and casts operands to compute_dtype.
      bf16 operands are a valid fast path on v5e as well as v6e/v7x: the MXU
      consumes bf16 natively everywhere; all VPU work in the kernel is f32.
    """
    N, K = weight.shape
    assert bias.shape == (N,)
    op_bytes = jnp.dtype(compute_dtype).itemsize
    tk, tn = _choose_lane_tiles(K, N, op_bytes)
    Kp, Np = _round_up(K, tk), _round_up(N, tn)
    w_t = jnp.pad(weight.T, ((0, Kp - K), (0, Np - N))).astype(compute_dtype)
    b_p = jnp.pad(bias, (0, Np - N)).reshape(1, Np).astype(jnp.float32)
    return dict(w=w_t, b=b_p, k_in=K, n_out=N, tk=tk, tn=tn,
                compute_dtype=compute_dtype)


# ------------------------------ forward -------------------------------------


def linear_forward(x, params, *, out_dtype=None):
    """y = x @ weight.T + bias (PyTorch nn.Linear semantics), weight prepped."""
    M, K = x.shape
    assert K == params["k_in"]
    w, b = params["w"], params["b"]
    tk, tn = params["tk"], params["tn"]
    compute_dtype = params["compute_dtype"]
    Kp, Np = w.shape
    N = params["n_out"]
    out_dtype = x.dtype if out_dtype is None else out_dtype

    grid_n = Np // tn
    tm = _choose_tm(M, grid_n)
    Mp = _round_up(M, tm)
    grid_m, grid_k = Mp // tm, Kp // tk

    # Per-call x prep: only pad/cast when actually needed (zero K-padding
    # contributes nothing to the dot; padded M rows are sliced off below).
    xp = x if (Mp == M and Kp == K) else jnp.pad(x, ((0, Mp - M), (0, Kp - K)))
    if xp.dtype != compute_dtype:
        xp = xp.astype(compute_dtype)

    op_bytes = jnp.dtype(compute_dtype).itemsize
    out_bytes = jnp.dtype(out_dtype).itemsize
    single_k = grid_k == 1
    use_scratch = (not single_k) and out_dtype != jnp.float32

    # Double-buffered x/w/bias/out blocks (+ f32 scratch if used).
    vmem_need = (2 * (tm * tk + tk * tn) * op_bytes
                 + 2 * tn * 4
                 + 2 * tm * tn * out_bytes
                 + (tm * tn * 4 if use_scratch else 0))
    vmem_limit = int(min(max(vmem_need + (4 << 20), 32 << 20), 48 << 20))

    cost = pl.CostEstimate(
        flops=2 * Mp * Kp * Np,
        transcendentals=0,
        bytes_accessed=(Mp * Kp * op_bytes * grid_n      # x re-read per N tile
                        + Kp * Np * op_bytes * grid_m    # W re-read per M tile
                        + Np * 4 * grid_m                # bias
                        + Mp * Np * out_bytes),          # output write
    )

    if single_k:
        out_p = pl.pallas_call(
            _linear_kernel_2d,
            out_shape=jax.ShapeDtypeStruct((Mp, Np), out_dtype),
            grid=(grid_m, grid_n),
            in_specs=[
                pl.BlockSpec((tm, tk), lambda i, j: (i, 0)),   # x tile
                pl.BlockSpec((tk, tn), lambda i, j: (0, j)),   # W (K, N) tile
                pl.BlockSpec((1, tn), lambda i, j: (0, j)),    # bias tile
            ],
            out_specs=pl.BlockSpec((tm, tn), lambda i, j: (i, j)),
            compiler_params=pltpu.CompilerParams(
                dimension_semantics=("parallel", "parallel"),
                vmem_limit_bytes=vmem_limit),
            cost_estimate=cost,
        )(xp, w, b)
    else:
        kernel = (_linear_kernel_accum_cast if use_scratch
                  else _linear_kernel_accum_f32)
        scratch = [pltpu.VMEM((tm, tn), jnp.float32)] if use_scratch else []
        out_p = pl.pallas_call(
            kernel,
            out_shape=jax.ShapeDtypeStruct((Mp, Np), out_dtype),
            grid=(grid_m, grid_n, grid_k),
            in_specs=[
                pl.BlockSpec((tm, tk), lambda i, j, k: (i, k)),   # x tile
                pl.BlockSpec((tk, tn), lambda i, j, k: (k, j)),   # W (K, N) tile
                pl.BlockSpec((1, tn), lambda i, j, k: (0, j)),    # bias tile
            ],
            out_specs=pl.BlockSpec((tm, tn), lambda i, j, k: (i, j)),
            scratch_shapes=scratch,
            compiler_params=pltpu.CompilerParams(
                dimension_semantics=("parallel", "parallel", "arbitrary"),
                vmem_limit_bytes=vmem_limit),
            cost_estimate=cost,
        )(xp, w, b)

    return out_p[:M, :N]


# ------------------------------- driver -------------------------------------


if __name__ == "__main__":
    root = jax.random.PRNGKey(0)

    def run_case(case_key, B, D_in, D_out, compute_dtype, out_dtype, atol, rtol):
        kx, kw, kb = jax.random.split(case_key, 3)
        bound = 1.0 / (D_in ** 0.5)  # mimics nn.Linear uniform init
        x = jax.random.normal(kx, (B, D_in), dtype=jnp.float32)
        weight = jax.random.uniform(kw, (D_out, D_in), minval=-bound,
                                    maxval=bound, dtype=jnp.float32)
        bias = jax.random.uniform(kb, (D_out,), minval=-bound, maxval=bound,
                                  dtype=jnp.float32)

        params = prepare_linear_params(weight, bias, compute_dtype=compute_dtype)
        out = jax.block_until_ready(
            linear_forward(x, params, out_dtype=out_dtype))
        ref = jnp.dot(x, weight.T,
                      precision=jax.lax.Precision.HIGHEST) + bias
        assert out.shape == (B, D_out) and out.dtype == out_dtype
        out_f32 = out.astype(jnp.float32)
        max_err = float(jnp.max(jnp.abs(out_f32 - ref)))
        assert jnp.allclose(out_f32, ref, atol=atol, rtol=rtol), (
            f"mismatch ({B},{D_in},{D_out},{compute_dtype},{out_dtype}): "
            f"max abs err {max_err}")

    k1, k2, k3 = jax.random.split(root, 3)

    # Small shapes consistent with the module: batch=8, input_dim=32,
    # output_dim=16 (single K block -> 2-D grid, lane-dense 128-padded tile).
    run_case(k1, 8, 32, 16, jnp.float32, jnp.float32, 1e-4, 1e-4)

    # Larger f32 case exercising the multi-K path that accumulates directly
    # into the resident f32 output block (no scratch), with a 2x1x2 grid so
    # the parallel M axis has 2 tiles.
    run_case(k2, 256, 2048, 384, jnp.float32, jnp.float32, 2e-3, 2e-3)

    # bf16 MXU operands + bf16 output exercising the f32-scratch accumulator
    # path (valid fast path on v5e/v6e/v7x; accumulation stays f32).
    run_case(k3, 256, 4096, 384, jnp.bfloat16, jnp.bfloat16, 1e-1, 1e-1)

    print("KERNEL_OK")
</pallas_src>

<mosaic_0001>
module attributes {stable_mosaic.version = 11 : i64} {
  func.func @_linear_kernel_2d(%arg0: i32, %arg1: i32, %arg2: memref<8x128xf32, #tpu.memory_space<vmem>>, %arg3: memref<128x128xf32, #tpu.memory_space<vmem>>, %arg4: memref<1x128xf32, #tpu.memory_space<vmem>>, %arg5: memref<8x128xf32, #tpu.memory_space<vmem>>) attributes {dimension_semantics = [#tpu.dimension_semantics<parallel>, #tpu.dimension_semantics<parallel>], iteration_bounds = array<i64: 1, 1>, scalar_prefetch = 0 : i64, scratch_operands = 0 : i64, tpu.core_type = #tpu.core_type<tc>, window_params = [{transform_indices = @transform_0, window_bounds = array<i64: 8, 128>}, {transform_indices = @transform_1, window_bounds = array<i64: 128, 128>}, {transform_indices = @transform_2, window_bounds = array<i64: 1, 128>}, {transform_indices = @transform_3, window_bounds = array<i64: 8, 128>}]} {
    %c0 = arith.constant 0 : index
    %c0_0 = arith.constant 0 : index
    %0 = vector.load %arg2[%c0, %c0_0] : memref<8x128xf32, #tpu.memory_space<vmem>>, vector<8x128xf32>
    %c0_1 = arith.constant 0 : index
    %c0_2 = arith.constant 0 : index
    %1 = vector.load %arg3[%c0_1, %c0_2] : memref<128x128xf32, #tpu.memory_space<vmem>>, vector<128x128xf32>
    %cst = arith.constant dense<0.000000e+00> : vector<8x128xf32>
    %2 = tpu.matmul %0, %1, %cst {dimension_numbers = #tpu.dot_dimension_numbers<[1], [0], [0], [1], [0, 0, 1, 1], [], []>} : vector<8x128xf32>, vector<128x128xf32>, vector<8x128xf32> -> vector<8x128xf32>
    %c0_3 = arith.constant 0 : index
    %c0_4 = arith.constant 0 : index
    %3 = vector.load %arg4[%c0_3, %c0_4] : memref<1x128xf32, #tpu.memory_space<vmem>>, vector<1x128xf32>
    %4 = vector.broadcast %3 : vector<1x128xf32> to vector<8x128xf32>
    %5 = arith.addf %2, %4 : vector<8x128xf32>
    %c0_5 = arith.constant 0 : index
    %c0_6 = arith.constant 0 : index
    %6 = vector.load %arg5[%c0_5, %c0_6] : memref<8x128xf32, #tpu.memory_space<vmem>>, vector<8x128xf32>
    tpu.vector_store %arg5[%c0_5, %c0_6], %5 {strides = array<i32>} : memref<8x128xf32, #tpu.memory_space<vmem>>, vector<8x128xf32>,
    return
  }
  func.func @transform_0(%arg0: i32, %arg1: i32) -> (i32, i32) {
    %c0_i32 = arith.constant 0 : i32
    %c0_i32_0 = arith.constant 0 : i32
    return %arg0, %c0_i32 : i32, i32
  }
  func.func @transform_1(%arg0: i32, %arg1: i32) -> (i32, i32) {
    %c0_i32 = arith.constant 0 : i32
    %c0_i32_0 = arith.constant 0 : i32
    return %c0_i32, %arg1 : i32, i32
  }
  func.func @transform_2(%arg0: i32, %arg1: i32) -> (i32, i32) {
    %c0_i32 = arith.constant 0 : i32
    %c0_i32_0 = arith.constant 0 : i32
    return %c0_i32, %arg1 : i32, i32
  }
  func.func @transform_3(%arg0: i32, %arg1: i32) -> (i32, i32) {
    %c0_i32 = arith.constant 0 : i32
    return %arg0, %arg1 : i32, i32
  }
}

</mosaic_0001>

<bundles_post_ra>
// kernel: tpu_custom_call.1
= control target key start
LH: loop header
LB: loop body
LE: loop exit
PB: predicated region body
PF: predicated region fallthrough
CT: control target
= control target key end

     0   :  { %8 = vsyncpa [#allocation3], 0  ;;  %s317_s0 = inlined_call_operand.hbm [shape: f32[8,128], index: 0, kind: input, shape index: {}]   ;;  %s318_s1 = inlined_call_operand.hbm [shape: f32[128,128], index: 1, kind: input, shape index: {}]   ;;  %s319_s2 = inlined_call_operand.vmem [shape: f32[1,128], index: 2, kind: input, shape index: {}]   ;;  %s320_s3 = inlined_call_operand.hbm [shape: f32[8,128], index: 3, kind: output, shape index: {}]  }
   0x1   :  { %9 = vsyncpa [#allocation6], 0 }
   0x2   :  { %10 = vsyncpa [#allocation4], 0  ;;  %s278_s12 = smov [#allocation2]   ;;  %s279_s14 = smov [#allocation5]  }
   0x3   :  { %s17_s13 = sshll.u32 %s278_s12, 4  ;;  %s26_s15 = sshll.u32 %s279_s14, 4  ;;  %s18_s13 = int_to_ptr.vmem [resolvable:$true] %s17_s13  ;;  %s27_s15 = int_to_ptr.vmem [resolvable:$true] %s26_s15 }
   0x4   :  { %s220_s16 = scalar_lea.vmem %s18_s13, 128  ;;  %p225_p1 = scmp.lt.s32.totalorder %s18_s13, %s18_s13 }
   0x5   :  { %p221_p0 = scmp.ne.s32.totalorder %s18_s13, %s220_s16  ;;  %p226_p2 = scmp.lt.s32.totalorder %s220_s16, %s220_s16 }
   0x7   :  { %p227_p3 = por %p226_p2, %p225_p1 }
   0x9   :  { %p228_p4 = pnand %p227_p3, %p221_p0 }
   0xb   :  { %231 = shalt.err (!%p228_p4)
}
   0xc   :  { %20 = dma.hbm_to_vmem [thread:$0]  %s317_s0, 128, %s18_s13, [#allocation3]  }
   0xd   :  { %s240_s19 = scalar_lea.vmem %s27_s15, 2048  ;;  %p245_p6 = scmp.lt.s32.totalorder %s27_s15, %s27_s15 }
   0xe   :  { %p241_p5 = scmp.ne.s32.totalorder %s27_s15, %s240_s19  ;;  %p246_p7 = scmp.lt.s32.totalorder %s240_s19, %s240_s19 }
  0x10   :  { %p247_p8 = por %p246_p7, %p245_p6 }
  0x12   :  { %p248_p9 = pnand %p247_p8, %p241_p5 }
  0x14   :  { %251 = shalt.err (!%p248_p9)
}
  0x15   :  { %s280_s20 = smov 128   ;;  %s281_s21 = smov 8  }
  0x16   :  { %32 = dma.hbm_to_vmem [thread:$0]  %s318_s1, 2048, %s27_s15, [#allocation6], %s280_s20, %s280_s20, %s281_s21  }
  0x17   :  { %272 = dma.done.wait [#allocation3], 128  }
  0x18   :  { %273 = vsyncadd [#allocation3], 4294967168 }
  0x19   :  { %274 = dma.done.wait [#allocation6], 2048  }
  0x1a   :  { %275 = vsyncadd [#allocation6], 4294965248  ;;  %v282_v0 = vmov 0.0   ;;  %vm283_vm0 = vmmov 0   ;;  %v57_v1 = vld [vmem:[#allocation5 + $0x78] sm:$0xff]  ;;  %v56_v2 = vld [vmem:[#allocation5 + $0x70] sm:$0xff] }
  0x1b   :  { %170 = vmatprep.subr.mxu0 %v282_v0  ;;  %202 = vmatprep.mubr.msk.f32.mxu0 %vm283_vm0, %v282_v0  ;;  %v55_v3 = vld [vmem:[#allocation5 + $0x68] sm:$0xff]  ;;  %v54_v4 = vld [vmem:[#allocation5 + $0x60] sm:$0xff]  ;;  %v53_v5 = vld [vmem:[#allocation5 + $0x58] sm:$0xff]  ;;  %s284_s24 = smov [#allocation7]  }
  0x1c   :  { %171 = vmatpush3.msra.mxu0 %v57_v1  ;;  %v52_v6 = vld [vmem:[#allocation5 + $0x50] sm:$0xff]  ;;  %v51_v7 = vld [vmem:[#allocation5 + $0x48] sm:$0xff]  ;;  %v50_v8 = vld [vmem:[#allocation5 + $0x40] sm:$0xff]  ;;  %s142_s25 = sshll.u32 %s284_s24, 4  ;;  %s143_s25 = int_to_ptr.vmem [resolvable:$true] %s142_s25 }
  0x1d   :  { %172 = vmatprep.subr.mxu0 %v282_v0  ;;  %v49_v9 = vld [vmem:[#allocation5 + $0x38] sm:$0xff]  ;;  %v48_v10 = vld [vmem:[#allocation5 + $0x30] sm:$0xff]  ;;  %v47_v11 = vld [vmem:[#allocation5 + $0x28] sm:$0xff]  ;;  %s252_s26 = scalar_lea.vmem %s143_s25, 128  ;;  %p257_p11 = scmp.lt.s32.totalorder %s143_s25, %s143_s25 }
  0x1e   :  { %173 = vmatpush3.msra.mxu0 %v56_v2  ;;  %v46_v12 = vld [vmem:[#allocation5 + $0x20] sm:$0xff]  ;;  %v45_v13 = vld [vmem:[#allocation5 + $0x18] sm:$0xff]  ;;  %v44_v14 = vld [vmem:[#allocation5 + $0x10] sm:$0xff]  ;;  %p253_p10 = scmp.ne.s32.totalorder %s143_s25, %s252_s26  ;;  %p258_p12 = scmp.lt.s32.totalorder %s252_s26, %s252_s26 }
  0x1f   :  { %174 = vmatprep.subr.mxu0 %v282_v0  ;;  %v43_v15 = vld [vmem:[#allocation5 + $0x8] sm:$0xff]  ;;  %v42_v16 = vld [vmem:[#allocation5] sm:$0xff]  ;;  %v41_v17 = vld [vmem:[#allocation2] sm:$0xff] }
  0x20   :  { %175 = vmatpush3.msra.mxu0 %v55_v3  ;;  %v152_v18 = vld [vmem:[%s319_s2] ss:$0 sm:$0xff]  ;;  %p259_p13 = por %p258_p12, %p257_p11 }
  0x21   :  { %176 = vmatprep.subr.mxu0 %v282_v0 }
  0x22   :  { %177 = vmatpush3.msra.mxu0 %v54_v4  ;;  %p260_p0 = pnand %p259_p13, %p253_p10 }
  0x23   :  { %178 = vmatprep.subr.mxu0 %v282_v0 }
  0x24   :  { %179 = vmatpush3.msra.mxu0 %v53_v5 }
  0x25   :  { %180 = vmatprep.subr.mxu0 %v282_v0 }
  0x26   :  { %181 = vmatpush3.msra.mxu0 %v52_v6 }
  0x27   :  { %182 = vmatprep.subr.mxu0 %v282_v0 }
  0x28   :  { %183 = vmatpush3.msra.mxu0 %v51_v7 }
  0x29   :  { %184 = vmatprep.subr.mxu0 %v282_v0 }
  0x2a   :  { %185 = vmatpush3.msra.mxu0 %v50_v8 }
  0x2b   :  { %186 = vmatprep.subr.mxu0 %v282_v0 }
  0x2c   :  { %187 = vmatpush3.msra.mxu0 %v49_v9 }
  0x2d   :  { %188 = vmatprep.subr.mxu0 %v282_v0 }
  0x2e   :  { %189 = vmatpush3.msra.mxu0 %v48_v10 }
  0x2f   :  { %190 = vmatprep.subr.mxu0 %v282_v0 }
  0x30   :  { %191 = vmatpush3.msra.mxu0 %v47_v11 }
  0x31   :  { %192 = vmatprep.subr.mxu0 %v282_v0 }
  0x32   :  { %193 = vmatpush3.msra.mxu0 %v46_v12 }
  0x33   :  { %194 = vmatprep.subr.mxu0 %v282_v0 }
  0x34   :  { %195 = vmatpush3.msra.mxu0 %v45_v13 }
  0x35   :  { %196 = vmatprep.subr.mxu0 %v282_v0 }
  0x36   :  { %197 = vmatpush3.msra.mxu0 %v44_v14 }
  0x37   :  { %198 = vmatprep.subr.mxu0 %v282_v0 }
  0x38   :  { %199 = vmatpush3.msra.mxu0 %v43_v15 }
  0x39   :  { %200 = vmatprep.subr.mxu0 %v282_v0 }
  0x3a   :  { %201 = vmatpush3.msra.mxu0 %v42_v16 }
  0x3b   :  { %203 = vmatmul.mubr.f32.vlgmr.msra.gmra.mxu0 %v41_v17 }
  0xfb   :  { %v131_v19 = vpop.f32.mrf.mxu0 }
  0xfc   :  { %v132_v20 = vadd.f32 %v152_v18, %v131_v19 }
  0xfd   :  { %v204_v21 = vpop.f32.mrf.mxu0 }
  0xfe   :  { %135 = vst [vmem:[#allocation7] sm:$0xff] %v132_v20 }
  0xff   :  { %263 = shalt.err (!%p260_p0)
}
 0x100   :  { %145 = dma.vmem_to_hbm [thread:$0]  %s143_s25, 128, %s320_s3, [#allocation4]  }
 0x101   :  { %276 = dma.done.wait [#allocation4], 128  }
 0x102   :  { %277 = vsyncadd [#allocation4], 4294967168 }
 0x103   :  { %149 = vsyncpa [#allocation3], 1 }
 0x104   :  { %150 = vsyncpa [#allocation6], 1 }
 0x105   :  { %151 = vsyncpa [#allocation4], 1 }

</bundles_post_ra>
